<compile_context>
chip_gen: v5e
topology: v5e:2x2
jax: 0.10.0
libtpu: 0.0.40
codegen_flags: <defaults>
</compile_context>

<pallas_src>
import jax
import jax.numpy as jnp
from jax import lax
from jax.experimental import pallas as pl
from jax.experimental.pallas import tpu as pltpu

_LANE = 128
_SUBLANE = 8


def _cdiv(a, b):
    return (a + b - 1) // b


def _round_up(x, m):
    return ((x + m - 1) // m) * m


def _vmem_limit_bytes():
    """Per-generation scoped-VMEM request (v5e/v6e: 128 MiB parts, v7x: 64 MiB)."""
    try:
        cap = int(pltpu.get_tpu_info().vmem_capacity_bytes)
    except Exception:
        cap = 64 * 1024 * 1024            # conservative fallback (v7x per-TC VMEM)
    return min((cap * 3) // 4, 96 * 1024 * 1024)


def _choose_tile_rows(c, in_itemsize, vmem_limit):
    """Byte-based tile sizing against the real VMEM footprint (lane-padded)."""
    c_pad = _round_up(c, _LANE)
    per_row = (
        2 * c_pad * in_itemsize      # double-buffered logits block
        + 2 * _LANE * 4              # double-buffered (TN, 2) f32 side stream (lane-padded)
        + 5 * c_pad * 4              # ~5 live (TN, Cpad) f32/i32 kernel temporaries
        + 4 * _LANE * 4              # a few (TN, 1) f32 row temporaries
    )
    usable = int(vmem_limit * 0.6)   # headroom for compiler-internal scratch
    rows = usable // per_row
    rows = max(_SUBLANE, min(int(rows), 1 << 16))
    return (rows // _SUBLANE) * _SUBLANE


def _make_kernel(neg_factor, num_classes, n_total, tile_n, n_inner, n_full):
    k_neg = float(neg_factor) / float(num_classes)     # weight of every class
    k_pos = 1.0 - float(neg_factor) - k_neg            # extra weight of target class
    c_lse = 1.0 - k_neg                                 # = k_neg*C + k_pos

    def kernel(logits_ref, tw_ref, out_ref, acc_ref):
        p = pl.program_id(0)          # outer ("parallel") slice -> one per TensorCore
        i = pl.program_id(1)          # inner ("arbitrary") reduction step

        @pl.when(i == 0)
        def _():
            acc_ref[...] = jnp.zeros_like(acc_ref)

        x = logits_ref[...].astype(jnp.float32)          # (TN, C) f32, cast in VMEM
        tn, c = x.shape

        tgt = tw_ref[:, 0:1].astype(jnp.int32)           # (TN, 1) class index (exact)
        w = tw_ref[:, 1:2]                               # (TN, 1) f32 weight

        # numerically stable log-sum-exp
        m = jnp.max(x, axis=-1, keepdims=True)           # (TN, 1)  XLU
        e = jnp.exp(x - m)                                # (TN, C)  VPU + EUP
        lse = m + jnp.log(jnp.sum(e, axis=-1, keepdims=True))        # (TN, 1)

        # reductions over raw logits (shorter live ranges than via `shifted`)
        sum_x = jnp.sum(x, axis=-1, keepdims=True)        # (TN, 1)
        col = lax.broadcasted_iota(jnp.int32, (tn, c), 1)
        x_t = jnp.sum(jnp.where(col == tgt, x, 0.0), axis=-1, keepdims=True)

        loss = (jnp.float32(c_lse) * lse
                - jnp.float32(k_neg) * sum_x
                - jnp.float32(k_pos) * x_t) * w           # (TN, 1) weighted row loss

        b = p * n_inner + i                               # logical (unclamped) row-tile

        @pl.when(b < n_full)                              # fully in-range tile: no mask
        def _():
            acc_ref[...] += jnp.sum(loss, keepdims=True)

        @pl.when(b >= n_full)                             # partial / phantom tail tile
        def _():
            rows = b * tile_n + lax.broadcasted_iota(jnp.int32, (tn, 1), 0)
            # select (not multiply) so stale / duplicated tail data cannot leak
            acc_ref[...] += jnp.sum(jnp.where(rows < n_total, loss, 0.0),
                                    keepdims=True)

        @pl.when(i == n_inner - 1)
        def _():
            # each outer slice owns a private (8, 128) output block
            out_ref[...] = jnp.broadcast_to(acc_ref[...], out_ref.shape)

    return kernel


def label_smooth_ce_loss(logits, targets, weight, neg_factor=0.1, tile_rows=None):
    """logits: (B, P, C); targets: (B, P) int; weight: (B, P) float -> scalar f32."""
    B, P, C = logits.shape
    N = B * P
    logits2d = logits.reshape(N, C)                 # original dtype: no f32 HBM copy
    # single packed side stream: [target as f32 (exact for C < 2^24), weight]
    tw = jnp.concatenate(
        [targets.reshape(N, 1).astype(jnp.float32),
         weight.reshape(N, 1).astype(jnp.float32)], axis=1)

    in_itemsize = jnp.dtype(logits.dtype).itemsize
    vmem_limit = _vmem_limit_bytes()

    if tile_rows is not None:
        tn = max(_SUBLANE, (int(tile_rows) // _SUBLANE) * _SUBLANE)
    else:
        tn = _choose_tile_rows(C, in_itemsize, vmem_limit)

    if tn >= N:
        tn, n_tiles, p_outer, n_inner = N, 1, 1, 1          # single full-extent block
    else:
        n_tiles = _cdiv(N, tn)
        p_outer = 2 if n_tiles >= 2 else 1                   # always feed both TCs
        n_inner = _cdiv(n_tiles, p_outer)
    n_full = N // tn                                          # tiles with no OOB rows
    last_blk = n_tiles - 1

    kernel = _make_kernel(neg_factor, C, N, tn, n_inner, n_full)

    def row_map(p, i):
        # clamp so the phantom tail tile (odd tile count split across 2 cores)
        # re-reads the last real tile; its rows are masked out in-kernel.
        return (jnp.minimum(p * n_inner + i, last_blk), 0)

    grid_spec = pltpu.PrefetchScalarGridSpec(
        num_scalar_prefetch=0,
        grid=(p_outer, n_inner),
        in_specs=[
            pl.BlockSpec((tn, C), row_map),
            pl.BlockSpec((tn, 2), row_map),
        ],
        out_specs=pl.BlockSpec((8, 128), lambda p, i: (p, 0)),
        scratch_shapes=[pltpu.VMEM((1, 1), jnp.float32)],
    )

    cost = pl.CostEstimate(
        flops=6 * N * C,
        transcendentals=N * C + 2 * N,
        bytes_accessed=N * C * in_itemsize + N * 2 * 4 + p_outer * 8 * 128 * 4,
    )

    out = pl.pallas_call(
        kernel,
        out_shape=jax.ShapeDtypeStruct((p_outer * 8, 128), jnp.float32),
        grid_spec=grid_spec,
        compiler_params=pltpu.CompilerParams(
            dimension_semantics=("parallel", "arbitrary"),
            vmem_limit_bytes=vmem_limit,
        ),
        cost_estimate=cost,
    )(logits2d, tw)

    partials = out[::8, 0]                          # one partial sum per outer slice
    return jnp.sum(partials) / jnp.float32(N)       # mean with avg_factor = B*P


def _reference(logits, targets, weight, neg_factor=0.1):
    B, P, C = logits.shape
    N = B * P
    x = logits.reshape(N, C).astype(jnp.float32)
    t = targets.reshape(N).astype(jnp.int32)
    w = weight.reshape(N).astype(jnp.float32)
    logs = jax.nn.log_softmax(x, axis=1)
    lb = jnp.full((N, C), neg_factor / C, jnp.float32)
    lb = lb.at[jnp.arange(N), t].set(1.0 - neg_factor)
    loss = -jnp.sum(logs * lb, axis=1)
    return jnp.sum(loss * w) / (B * P)


if __name__ == "__main__":
    key = jax.random.PRNGKey(0)
    ks = jax.random.split(key, 12)

    # Case 1: small single-tile case, bf16 logits fed straight to the kernel.
    B, P, C = 2, 8, 32
    logits = jax.random.normal(ks[0], (B, P, C), dtype=jnp.float32).astype(jnp.bfloat16)
    targets = jax.random.randint(ks[1], (B, P), 0, C, dtype=jnp.int32)
    weight = jax.random.uniform(ks[2], (B, P), dtype=jnp.float32)
    out = jax.block_until_ready(label_smooth_ce_loss(logits, targets, weight, 0.1))
    ref = _reference(logits, targets, weight, 0.1)
    assert jnp.allclose(out, ref, atol=1e-5, rtol=1e-4), (out, ref)

    # Case 2: tiled path, even tile count split across both cores, partial tail.
    #         N=44, TN=8 -> 6 tiles, tiles 0..4 unmasked, tile 5 masked (rows 40..43).
    B2, P2, C2 = 2, 22, 32
    logits2 = jax.random.normal(ks[3], (B2, P2, C2), dtype=jnp.float32)
    targets2 = jax.random.randint(ks[4], (B2, P2), 0, C2, dtype=jnp.int32)
    weight2 = jax.random.uniform(ks[5], (B2, P2), dtype=jnp.float32)
    out2 = jax.block_until_ready(
        label_smooth_ce_loss(logits2, targets2, weight2, 0.1, tile_rows=8))
    ref2 = _reference(logits2, targets2, weight2, 0.1)
    assert jnp.allclose(out2, ref2, atol=1e-5, rtol=1e-4), (out2, ref2)

    # Case 3: odd tile count -> clamped phantom tail tile on the second core.
    #         N=40, TN=8 -> 5 tiles, both cores run 3 steps, block 5 fully masked.
    B3, P3, C3 = 2, 20, 32
    logits3 = jax.random.normal(ks[6], (B3, P3, C3), dtype=jnp.float32)
    targets3 = jax.random.randint(ks[7], (B3, P3), 0, C3, dtype=jnp.int32)
    weight3 = jax.random.uniform(ks[8], (B3, P3), dtype=jnp.float32)
    out3 = jax.block_until_ready(
        label_smooth_ce_loss(logits3, targets3, weight3, 0.1, tile_rows=8))
    ref3 = _reference(logits3, targets3, weight3, 0.1)
    assert jnp.allclose(out3, ref3, atol=1e-5, rtol=1e-4), (out3, ref3)

    # Case 4: non-multiple-of-128 class count, tile_rows not a multiple of 8
    #         (rounded down to 8 in the wrapper), partial + phantom tail.
    B4, P4, C4 = 3, 13, 200
    logits4 = jax.random.normal(ks[9], (B4, P4, C4), dtype=jnp.bfloat16)
    targets4 = jax.random.randint(ks[10], (B4, P4), 0, C4, dtype=jnp.int32)
    weight4 = jax.random.uniform(ks[11], (B4, P4), dtype=jnp.float32)
    out4 = jax.block_until_ready(
        label_smooth_ce_loss(logits4, targets4, weight4, 0.1, tile_rows=12))
    ref4 = _reference(logits4, targets4, weight4, 0.1)
    assert jnp.allclose(out4, ref4, atol=1e-5, rtol=1e-4), (out4, ref4)

    print("KERNEL_OK")
</pallas_src>

<mosaic_0001>
module attributes {stable_mosaic.version = 11 : i64} {
  func.func @kernel(%arg0: i32, %arg1: i32, %arg2: memref<16x32xbf16, #tpu.memory_space<vmem>>, %arg3: memref<16x2xf32, #tpu.memory_space<vmem>>, %arg4: memref<8x128xf32, #tpu.memory_space<vmem>>, %arg5: memref<1x1xf32, #tpu.memory_space<vmem>>) attributes {dimension_semantics = [#tpu.dimension_semantics<parallel>, #tpu.dimension_semantics<arbitrary>], iteration_bounds = array<i64: 1, 1>, scalar_prefetch = 0 : i64, scratch_operands = 1 : i64, tpu.core_type = #tpu.core_type<tc>, window_params = [{transform_indices = @transform_0, window_bounds = array<i64: 16, 32>}, {transform_indices = @transform_1, window_bounds = array<i64: 16, 2>}, {transform_indices = @transform_2, window_bounds = array<i64: 8, 128>}]} {
    %c0_i32 = arith.constant 0 : i32
    %0 = arith.cmpi eq, %arg1, %c0_i32 : i32
    %1 = arith.extui %0 : i1 to i32
    %c0_i32_0 = arith.constant 0 : i32
    %2 = arith.cmpi ne, %1, %c0_i32_0 : i32
    scf.if %2 {
      %cst_18 = arith.constant 0.000000e+00 : f32
      %46 = vector.broadcast %cst_18 : f32 to vector<1x1xf32>
      %c0_19 = arith.constant 0 : index
      %c0_20 = arith.constant 0 : index
      %47 = vector.load %arg5[%c0_19, %c0_20] : memref<1x1xf32, #tpu.memory_space<vmem>>, vector<1x1xf32>
      tpu.vector_store %arg5[%c0_19, %c0_20], %46 {strides = array<i32>} : memref<1x1xf32, #tpu.memory_space<vmem>>, vector<1x1xf32>,
    } else {
    }
    %c0 = arith.constant 0 : index
    %c0_1 = arith.constant 0 : index
    %3 = vector.load %arg2[%c0, %c0_1] : memref<16x32xbf16, #tpu.memory_space<vmem>>, vector<16x32xbf16>
    %4 = arith.extf %3 : vector<16x32xbf16> to vector<16x32xf32>
    %c0_2 = arith.constant 0 : index
    %c0_3 = arith.constant 0 : index
    %5 = vector.load %arg3[%c0_2, %c0_3] : memref<16x2xf32, #tpu.memory_space<vmem>>, vector<16x1xf32>
    %6 = arith.fptosi %5 : vector<16x1xf32> to vector<16x1xi32>
    %c0_4 = arith.constant 0 : index
    %c1 = arith.constant 1 : index
    %7 = vector.load %arg3[%c0_4, %c1] : memref<16x2xf32, #tpu.memory_space<vmem>>, vector<16x1xf32>
    %cst = arith.constant dense<0xFF800000> : vector<16xf32>
    %8 = vector.multi_reduction <maximumf>, %4, %cst [1] : vector<16x32xf32> to vector<16xf32>
    %9 = vector.shape_cast %8 : vector<16xf32> to vector<16x1xf32>
    %10 = vector.broadcast %9 : vector<16x1xf32> to vector<16x32xf32>
    %11 = arith.subf %4, %10 : vector<16x32xf32>
    %12 = math.exp %11 : vector<16x32xf32>
    %cst_5 = arith.constant dense<0.000000e+00> : vector<16xf32>
    %13 = vector.multi_reduction <add>, %12, %cst_5 [1] : vector<16x32xf32> to vector<16xf32>
    %14 = vector.shape_cast %13 : vector<16xf32> to vector<16x1xf32>
    %15 = math.log %14 : vector<16x1xf32>
    %16 = arith.addf %9, %15 : vector<16x1xf32>
    %cst_6 = arith.constant dense<0.000000e+00> : vector<16xf32>
    %17 = vector.multi_reduction <add>, %4, %cst_6 [1] : vector<16x32xf32> to vector<16xf32>
    %18 = vector.shape_cast %17 : vector<16xf32> to vector<16x1xf32>
    %19 = tpu.iota {dimensions = array<i32: 1>} : vector<16x32xi32>
    %20 = vector.broadcast %6 : vector<16x1xi32> to vector<16x32xi32>
    %21 = arith.cmpi eq, %19, %20 : vector<16x32xi32>
    %cst_7 = arith.constant 0.000000e+00 : f32
    %22 = vector.broadcast %cst_7 : f32 to vector<16x32xf32>
    %23 = arith.select %21, %4, %22 : vector<16x32xi1>, vector<16x32xf32>
    %cst_8 = arith.constant dense<0.000000e+00> : vector<16xf32>
    %24 = vector.multi_reduction <add>, %23, %cst_8 [1] : vector<16x32xf32> to vector<16xf32>
    %25 = vector.shape_cast %24 : vector<16xf32> to vector<16x1xf32>
    %cst_9 = arith.constant 0.996874988 : f32
    %26 = vector.broadcast %cst_9 : f32 to vector<16x1xf32>
    %27 = arith.mulf %26, %16 : vector<16x1xf32>
    %cst_10 = arith.constant 3.125000e-03 : f32
    %28 = vector.broadcast %cst_10 : f32 to vector<16x1xf32>
    %29 = arith.mulf %28, %18 : vector<16x1xf32>
    %30 = arith.subf %27, %29 : vector<16x1xf32>
    %cst_11 = arith.constant 8.968750e-01 : f32
    %31 = vector.broadcast %cst_11 : f32 to vector<16x1xf32>
    %32 = arith.mulf %31, %25 : vector<16x1xf32>
    %33 = arith.subf %30, %32 : vector<16x1xf32>
    %34 = arith.mulf %33, %7 : vector<16x1xf32>
    %c1_i32 = arith.constant 1 : i32
    %35 = arith.muli %arg0, %c1_i32 : i32
    %36 = arith.addi %35, %arg1 : i32
    %c1_i32_12 = arith.constant 1 : i32
    %37 = arith.cmpi slt, %36, %c1_i32_12 : i32
    %38 = arith.extui %37 : i1 to i32
    %c0_i32_13 = arith.constant 0 : i32
    %39 = arith.cmpi ne, %38, %c0_i32_13 : i32
    scf.if %39 {
      %c0_18 = arith.constant 0 : index
      %c0_19 = arith.constant 0 : index
      %46 = vector.load %arg5[%c0_18, %c0_19] : memref<1x1xf32, #tpu.memory_space<vmem>>, vector<1x1xf32>
      %47 = vector.shape_cast %34 : vector<16x1xf32> to vector<1x16x1xf32>
      %cst_20 = arith.constant dense<0.000000e+00> : vector<1xf32>
      %48 = vector.multi_reduction <add>, %47, %cst_20 [1, 2] : vector<1x16x1xf32> to vector<1xf32>
      %49 = vector.shape_cast %48 : vector<1xf32> to vector<1x1x1xf32>
      %50 = vector.extract %49[0, 0, 0] : f32 from vector<1x1x1xf32>
      %51 = vector.broadcast %50 : f32 to vector<1x1xf32>
      %52 = arith.addf %46, %51 : vector<1x1xf32>
      %c0_21 = arith.constant 0 : index
      %c0_22 = arith.constant 0 : index
      %53 = vector.load %arg5[%c0_21, %c0_22] : memref<1x1xf32, #tpu.memory_space<vmem>>, vector<1x1xf32>
      tpu.vector_store %arg5[%c0_21, %c0_22], %52 {strides = array<i32>} : memref<1x1xf32, #tpu.memory_space<vmem>>, vector<1x1xf32>,
    } else {
    }
    %c1_i32_14 = arith.constant 1 : i32
    %40 = arith.cmpi sge, %36, %c1_i32_14 : i32
    %41 = arith.extui %40 : i1 to i32
    %c0_i32_15 = arith.constant 0 : i32
    %42 = arith.cmpi ne, %41, %c0_i32_15 : i32
    scf.if %42 {
      %c16_i32 = arith.constant 16 : i32
      %46 = arith.muli %36, %c16_i32 : i32
      %47 = tpu.iota {dimensions = array<i32: 0>} : vector<16x1xi32>
      %48 = vector.broadcast %46 : i32 to vector<16x1xi32>
      %49 = arith.addi %48, %47 : vector<16x1xi32>
      %c0_18 = arith.constant 0 : index
      %c0_19 = arith.constant 0 : index
      %50 = vector.load %arg5[%c0_18, %c0_19] : memref<1x1xf32, #tpu.memory_space<vmem>>, vector<1x1xf32>
      %c16_i32_20 = arith.constant 16 : i32
      %51 = vector.broadcast %c16_i32_20 : i32 to vector<16x1xi32>
      %52 = arith.cmpi slt, %49, %51 : vector<16x1xi32>
      %cst_21 = arith.constant 0.000000e+00 : f32
      %53 = vector.broadcast %cst_21 : f32 to vector<16x1xf32>
      %54 = arith.select %52, %34, %53 : vector<16x1xi1>, vector<16x1xf32>
      %55 = vector.shape_cast %54 : vector<16x1xf32> to vector<1x16x1xf32>
      %cst_22 = arith.constant dense<0.000000e+00> : vector<1xf32>
      %56 = vector.multi_reduction <add>, %55, %cst_22 [1, 2] : vector<1x16x1xf32> to vector<1xf32>
      %57 = vector.shape_cast %56 : vector<1xf32> to vector<1x1x1xf32>
      %58 = vector.extract %57[0, 0, 0] : f32 from vector<1x1x1xf32>
      %59 = vector.broadcast %58 : f32 to vector<1x1xf32>
      %60 = arith.addf %50, %59 : vector<1x1xf32>
      %c0_23 = arith.constant 0 : index
      %c0_24 = arith.constant 0 : index
      %61 = vector.load %arg5[%c0_23, %c0_24] : memref<1x1xf32, #tpu.memory_space<vmem>>, vector<1x1xf32>
      tpu.vector_store %arg5[%c0_23, %c0_24], %60 {strides = array<i32>} : memref<1x1xf32, #tpu.memory_space<vmem>>, vector<1x1xf32>,
    } else {
    }
    %c0_i32_16 = arith.constant 0 : i32
    %43 = arith.cmpi eq, %arg1, %c0_i32_16 : i32
    %44 = arith.extui %43 : i1 to i32
    %c0_i32_17 = arith.constant 0 : i32
    %45 = arith.cmpi ne, %44, %c0_i32_17 : i32
    scf.if %45 {
      %c0_18 = arith.constant 0 : index
      %c0_19 = arith.constant 0 : index
      %46 = vector.load %arg5[%c0_18, %c0_19] : memref<1x1xf32, #tpu.memory_space<vmem>>, vector<1x1xf32>
      %47 = vector.shape_cast %46 : vector<1x1xf32> to vector<1x1xf32>
      %48 = vector.broadcast %47 : vector<1x1xf32> to vector<8x128xf32>
      %c0_20 = arith.constant 0 : index
      %c0_21 = arith.constant 0 : index
      %49 = vector.load %arg4[%c0_20, %c0_21] : memref<8x128xf32, #tpu.memory_space<vmem>>, vector<8x128xf32>
      tpu.vector_store %arg4[%c0_20, %c0_21], %48 {strides = array<i32>} : memref<8x128xf32, #tpu.memory_space<vmem>>, vector<8x128xf32>,
    } else {
    }
    return
  }
  func.func @transform_0(%arg0: i32, %arg1: i32) -> (i32, i32) {
    %c1_i32 = arith.constant 1 : i32
    %0 = arith.muli %arg0, %c1_i32 : i32
    %1 = arith.addi %0, %arg1 : i32
    %c0_i32 = arith.constant 0 : i32
    %2 = arith.minsi %1, %c0_i32 : i32
    %c0_i32_0 = arith.constant 0 : i32
    %c0_i32_1 = arith.constant 0 : i32
    return %2, %c0_i32_0 : i32, i32
  }
  func.func @transform_1(%arg0: i32, %arg1: i32) -> (i32, i32) {
    %c1_i32 = arith.constant 1 : i32
    %0 = arith.muli %arg0, %c1_i32 : i32
    %1 = arith.addi %0, %arg1 : i32
    %c0_i32 = arith.constant 0 : i32
    %2 = arith.minsi %1, %c0_i32 : i32
    %c0_i32_0 = arith.constant 0 : i32
    %c0_i32_1 = arith.constant 0 : i32
    return %2, %c0_i32_0 : i32, i32
  }
  func.func @transform_2(%arg0: i32, %arg1: i32) -> (i32, i32) {
    %c0_i32 = arith.constant 0 : i32
    %c0_i32_0 = arith.constant 0 : i32
    return %arg0, %c0_i32 : i32, i32
  }
}

</mosaic_0001>

<bundles_post_ra>
// kernel: tpu_custom_call.1
= control target key start
LH: loop header
LB: loop body
LE: loop exit
PB: predicated region body
PF: predicated region fallthrough
CT: control target
= control target key end

     0   :  { %vm90_vm0 = vcmask 261120   ;;  %v319_v3 = vmov 0   ;;  %s370_s0 = inlined_call_operand.vmem [shape: bf16[16,32], index: 0, kind: input, shape index: {}]   ;;  %s371_s1 = inlined_call_operand.vmem [shape: f32[16,2], index: 1, kind: input, shape index: {}]   ;;  %s372_s2 = inlined_call_operand.hbm [shape: f32[8,128], index: 2, kind: output, shape index: {}]  }
   0x1   :  { %v263_v0 = vld [vmem:[%s370_s0] sm:$0xff]   ;;  %282 = vset.pattern.permute.xlu1 %v319_v3  ;;  %v351_v5 = vld [vmem:[%s371_s1 + $0x8] sm:$0xff]  ;;  %283 = vset.pattern.permute.xlu0 %v319_v3 }
   0x2   :  { %v344_v1 = vld [vmem:[%s371_s1] sm:$0xff]  ;;  %v264_v2 = vunpack.c.l.bf16 %v263_v0 }
   0x3   :  { %vm266_vm1 = vcmp.lt.s32.totalorder %v344_v1, 0  ;;  %v267_v4 = vceil.f32 %v344_v1 }
   0x4   :  { %7 = vsyncpa [#allocation4], 0  ;;  %v268_v6 = vfloor.f32 %v344_v1  ;;  %v91_v7 = vsel %vm90_vm0, %v264_v2, -inf  ;;  %v272_v9 = vceil.f32 %v351_v5  ;;  %v273_v10 = vfloor.f32 %v351_v5  ;;  %s320_s0 = smov 127   ;;  %s322_s15 = smov [#allocation3]  }
   0x5   :  { %92 = vmax.xlane.f32.xlu0 %v91_v7  ;;  %v265_v11 = vunpack.c.h.bf16 %v263_v0  ;;  %vm271_vm2 = vcmp.lt.s32.totalorder %v351_v5, 0  ;;  %v115_v16 = vsel %vm90_vm0, %v264_v2, 0.0  ;;  %v121_v22 = vlaneseq  ;;  %s239_s16 = sshll.u32 %s322_s15, 4  ;;  %s241_s19 = sshll.u32 %s372_s2, 4  ;;  %s240_s16 = int_to_ptr.vmem [resolvable:$true] %s239_s16  ;;  %s242_s19 = int_to_ptr.hbm [resolvable:$true] %s241_s19 }
   0x6   :  { %v269_v8 = vsel %vm266_vm1, %v267_v4, %v268_v6  ;;  %v274_v13 = vsel %vm271_vm2, %v272_v9, %v273_v10  ;;  %vm165_vm5 = vcmask 7168   ;;  %vm80_vm6 = vcmask 0  }
   0x7   :  { %v270_v12 = vcvt.f32.s32 %v269_v8  ;;  %v94_v14 = vsel %vm90_vm0, %v265_v11, -inf  ;;  %v275_v15 = vcvt.f32.s32 %v274_v13  ;;  %v118_v17 = vsel %vm90_vm0, %v265_v11, 0.0 }
   0x8   :  { %v122_v23 = vand.u32 127, %v121_v22 }
   0x9   :  { %124 = vperm.xlu1 %282, %v270_v12  }
   0xd   :  { %95 = vmax.xlane.f32.xlu0 %v94_v14 }
  0x11   :  { %127 = vperm.xlu1 %282, %v275_v15  }
  0x15   :  { %116 = vadd.xlane.f32.xlu0 %v115_v16 }
  0x3b   :  { %119 = vadd.xlane.f32.xlu1 %v118_v17 }
  0x78   :  { %v93_v18 = vpop.xlane.xlu0 %92 }
  0x79   :  { %v97_v19 = vsub.f32 %v264_v2, %v93_v18 }
  0x7b   :  { %v125_v20 = vpop.permute.xlu1 %124  ;;  %v99_v21 = vmul.f32 1.442695, %v97_v19 }
  0x7c   :  { %vm129_vm4 = vcmp.eq.s32.totalorder %v122_v23, %v125_v20 }
  0x7d   :  { %285 = vpow2.f32 %v99_v21  ;;  %v131_v34 = vsel %vm129_vm4, %v264_v2, 0.0  ;;  %v321_v2 = vmov 0.0  }
  0x7e   :  { %v133_v35 = vsel %vm90_vm0, %v131_v34, 0.0  ;;  %81 = vst.msk [vmem:[#allocation2] sm:$0x1] %vm80_vm6, %v321_v2 }
  0x80   :  { %v96_v24 = vpop.xlane.xlu0 %95 }
  0x81   :  { %v98_v25 = vsub.f32 %v265_v11, %v96_v24 }
  0x83   :  { %v128_v26 = vpop.permute.xlu1 %127  ;;  %v286_v27 = vpop.eup %285  ;;  %v101_v28 = vmul.f32 1.442695, %v98_v25 }
  0x84   :  { %vm130_vm3 = vcmp.eq.s32.totalorder %v122_v23, %v128_v26  ;;  %v103_v29 = vsel %vm90_vm0, %v286_v27, 0.0 }
  0x85   :  { %v132_v30 = vsel %vm130_vm3, %v265_v11, 0.0  ;;  %287 = vpow2.f32 %v101_v28  ;;  %104 = vadd.xlane.f32.xlu2 %v103_v29 }
  0x86   :  { %v136_v31 = vsel %vm90_vm0, %v132_v30, 0.0 }
  0x87   :  { %137 = vadd.xlane.f32.xlu0 %v136_v31 }
  0x88   :  { %v117_v40 = vpop.xlane.xlu0 %116 }
  0x89   :  { %v141_v43 = vmul.f32 0.003125, %v117_v40 }
  0x8b   :  { %v288_v32 = vpop.eup %287 }
  0x8c   :  { %v106_v33 = vsel %vm90_vm0, %v288_v32, 0.0 }
  0x8d   :  { %107 = vadd.xlane.f32.xlu2 %v106_v33 }
  0x95   :  { %134 = vadd.xlane.f32.xlu2 %v133_v35 }
  0xae   :  { %v120_v45 = vpop.xlane.xlu1 %119 }
  0xaf   :  { %v142_v51 = vmul.f32 0.003125, %v120_v45 }
  0xf8   :  { %v105_v36 = vpop.xlane.xlu2 %104 }
  0xf9   :  { %289 = vlog2.f32 %v105_v36 }
  0xfa   :  { %v138_v52 = vpop.xlane.xlu0 %137 }
  0xfb   :  { %v146_v56 = vmul.f32 0.896875, %v138_v52 }
  0xff   :  { %v290_v37 = vpop.eup %289 }
 0x100   :  { %v110_v38 = vmul.f32 0.6931472, %v290_v37  ;;  %v108_v39 = vpop.xlane.xlu2 %107 }
 0x101   :  { %291 = vlog2.f32 %v108_v39 }
 0x102   :  { %v113_v41 = vadd.f32 %v110_v38, %v93_v18 }
 0x104   :  { %v139_v42 = vmul.f32 0.996875, %v113_v41 }
 0x106   :  { %v143_v48 = vsub.f32 %v139_v42, %v141_v43 }
 0x107   :  { %v292_v44 = vpop.eup %291 }
 0x108   :  { %v112_v46 = vmul.f32 0.6931472, %v292_v44  ;;  %v135_v47 = vpop.xlane.xlu2 %134 }
 0x109   :  { %v145_v49 = vmul.f32 0.896875, %v135_v47 }
 0x10a   :  { %v114_v50 = vadd.f32 %v112_v46, %v96_v24 }
 0x10b   :  { %v147_v53 = vsub.f32 %v143_v48, %v145_v49 }
 0x10c   :  { %v140_v54 = vmul.f32 0.996875, %v114_v50 }
 0x10d   :  { %v149_v55 = vmul.f32 %v147_v53, %v344_v1 }
 0x10e   :  { %v144_v57 = vsub.f32 %v140_v54, %v142_v51 }
 0x10f   :  { %159 = vrot.lane.b32.xlu2 %v149_v55, %s320_s0 }
 0x110   :  { %v148_v58 = vsub.f32 %v144_v57, %v146_v56 }
 0x112   :  { %v150_v59 = vmul.f32 %v148_v58, %v351_v5  ;;  %v156_v5 = vld [vmem:[#allocation2] sm:$0x1] }
 0x114   :  { %161 = vrot.lane.b32.xlu0 %v150_v59, %s320_s0 }
 0x169   :  { %v160_v60 = vpop.permute.xlu2 %159 }
 0x16a   :  { %v166_v62 = vsel %vm165_vm5, %v160_v60, 0.0 }
 0x186   :  { %v162_v61 = vpop.permute.xlu0 %161 }
 0x187   :  { %v167_v63 = vsel %vm165_vm5, %v162_v61, 0.0 }
 0x188   :  { %v168_v0 = vadd.f32 %v167_v63, %v166_v62 }
 0x18a   :  { %169 = vadd.xlane.f32.xlu2 %v168_v0 }
 0x1fd   :  { %v170_v3 = vpop.xlane.xlu2 %169 }
 0x1fe   :  { %v171_v1 = vrot.slane %v170_v3, 4 }
 0x200   :  { %v172_v4 = vadd.f32 %v171_v1, %v170_v3 }
 0x202   :  { %v173_v6 = vrot.slane %v172_v4, 2 }
 0x204   :  { %v174_v7 = vadd.f32 %v173_v6, %v172_v4 }
 0x206   :  { %v175_v8 = vrot.slane %v174_v7, 1 }
 0x208   :  { %v176_v9 = vadd.f32 %v175_v8, %v174_v7 }
 0x20a   :  { %276 = vpush %v176_v9 }
 0x23b   :  { %s277_s1 = spop %276 }
 0x23c   :  { %v178_v10 = vstv %s277_s1 }
 0x23d   :  { %v179_v11 = vadd.f32 %v178_v10, %v156_v5 }
 0x23f   :  { %181 = vst.msk [vmem:[#allocation2] sm:$0x1] %vm80_vm6, %v179_v11 }
 0x246   :  { %v284_v12 = vld [vmem:[#allocation2] ss:$0 sm:$0xff] }
 0x247   :  { %230 = vperm.xlu0 %283, %v284_v12  }
 0x2b9   :  { %v231_v13 = vpop.permute.xlu0 %230 }
 0x2ba   :  { %233 = vst [vmem:[#allocation3] sm:$0xff] %v231_v13 }
 0x2bb   :  { %244 = dma.vmem_to_hbm [thread:$0]  %s240_s16, 128, %s242_s19, [#allocation4]  }
 0x2bc   :  { %317 = dma.done.wait [#allocation4], 128  }
 0x2bd   :  { %318 = vsyncadd [#allocation4], 4294967168 }
 0x2be   :  { %249 = vsyncpa [#allocation4], 1 }

</bundles_post_ra>
